<compile_context>
chip_gen: v7x
topology: tpu7x:2x2x1
jax: 0.10.0
libtpu: 0.0.40
codegen_flags: <defaults>
</compile_context>

<pallas_src>
import jax
import jax.numpy as jnp
from jax.experimental import pallas as pl
from jax.experimental.pallas import tpu as pltpu

# Model hyperparameters (small, consistent with the module __init__)
EMBED = 32
HEADS = 4
HEAD_DIM = EMBED // HEADS
FWD_EXP = 4
FFN = FWD_EXP * EMBED          # 128
SEQ = 8
BATCH = 2
EPS = 1e-5                     # nn.LayerNorm default

WIDE = 128                     # padded lane width of the fused K/V & FFN slabs
assert FFN == WIDE and 4 * EMBED == WIDE, "bias packing assumes FFN == 4*E == 128"

NEG_MASKED = -1e20             # within-batch masked positions (torch masked_fill value)
NEG_XBATCH = -1e30             # cross-batch blocks; must underflow exp() exactly in f32


def transformer_block_kernel(
    qf_ref,                    # (NS, E)        query activations
    kvf_ref,                   # (NS, 2E)       [key | value] activations
    bias_ref,                  # (NS, NHS)      additive attention bias
    dupT_ref,                  # (NHS, NS)      row-duplication (one copy per head)
    hmask2_ref,                # (NHS, WIDE)    per-head feature mask on K & V lane halves
    wq_ref,                    # (E, WIDE)      [wq/sqrt(E) | 0]
    wkv_ref,                   # (2E, WIDE)     block-diag(wk, wv), zero-padded
    wo_ref,                    # (WIDE, E)      rows E:2E = wo, else 0
    w1_ref,                    # (E, FFN)
    w2_ref,                    # (FFN, E)
    b128_ref,                  # (8, WIDE)      rows: 0=bq_pad 1=[bk|bv] 2=b1
    b32_ref,                   # (8, E)         rows: 0=bo 1=g1 2=be1 3=g2 4=be2 5=b2
    out_ref,                   # (NS, E)
):
    qf = qf_ref[...]                                    # (NS, E)

    # Packed 1-D parameters (single-row loads, broadcast over rows).
    bq = b128_ref[0:1, :]
    bkv = b128_ref[1:2, :]
    b1 = b128_ref[2:3, :]
    bo = b32_ref[0:1, :]
    g1 = b32_ref[1:2, :]
    be1 = b32_ref[2:3, :]
    g2 = b32_ref[3:4, :]
    be2 = b32_ref[4:5, :]
    b2 = b32_ref[5:6, :]

    # --- fused projections (1/sqrt(E) pre-folded into wq/bq) ---------------------
    # Qpad: lanes 0:E = scaled Q, lanes E:WIDE exactly 0.
    Qpad = jnp.dot(qf, wq_ref[...], preferred_element_type=jnp.float32) + bq          # (NS, WIDE)
    # KV:   lanes 0:E = K, lanes E:2E = V, lanes 2E:WIDE exactly 0.
    KV = jnp.dot(kvf_ref[...], wkv_ref[...], preferred_element_type=jnp.float32) + bkv  # (NS, WIDE)

    # Replicate every (batch, seq) K/V row once per head and keep only that head's
    # features in both the K and the V lane half.  One matmul for K and V together.
    hmask2 = hmask2_ref[...]                                                           # (NHS, WIDE)
    KVexp = jnp.dot(dupT_ref[...], KV, preferred_element_type=jnp.float32) * hmask2    # (NHS, WIDE)

    # All-batch, all-head energies in one lane-dense (NS, NHS) slab.  Contraction is
    # over all WIDE lanes: Qpad is zero outside the K lane half, so only Q.Kexp survives.
    energy = jax.lax.dot_general(
        Qpad, KVexp, (((1,), (1,)), ((), ())),
        preferred_element_type=jnp.float32) + bias_ref[...]                            # (NS, NHS)

    # Softmax with a single global row max (shift-invariant per head block).
    m = jnp.max(energy, axis=-1, keepdims=True)
    p = jnp.exp(energy - m)                                                            # (NS, NHS)
    # Cross-batch columns of p are exactly 0.0 (exp(NEG_XBATCH - m) underflows), so a
    # single p @ hmask2 gives the per-(batch, head) denominators on both lane halves.
    denom = jnp.dot(p, hmask2, preferred_element_type=jnp.float32)                     # (NS, WIDE)
    denom = jnp.maximum(denom, 1e-20)   # robustness: avoid inf/NaN if a head underflows

    o_un = jnp.dot(p, KVexp, preferred_element_type=jnp.float32)                       # (NS, WIDE)
    attn = o_un * pl.reciprocal(denom, approx=True)

    # Output projection: wo_ref is zero outside rows E:2E, so the K lane half and the
    # zero lane half of `attn` are annihilated.
    attn_out = jnp.dot(attn, wo_ref[...], preferred_element_type=jnp.float32) + bo     # (NS, E)

    # --- residual + LayerNorm1 (dropout = identity at inference) -----------------
    x = attn_out + qf
    mean = jnp.mean(x, axis=-1, keepdims=True)
    var = jnp.mean((x - mean) ** 2, axis=-1, keepdims=True)
    x = (x - mean) * jax.lax.rsqrt(var + EPS) * g1 + be1

    # --- feed forward: Linear(E -> 4E) -> ReLU -> Linear(4E -> E) ----------------
    h1 = jnp.dot(x, w1_ref[...], preferred_element_type=jnp.float32) + b1
    h1 = jnp.maximum(h1, 0.0)
    ff = jnp.dot(h1, w2_ref[...], preferred_element_type=jnp.float32) + b2

    # --- residual + LayerNorm2 ----------------------------------------------------
    y = ff + x
    mean2 = jnp.mean(y, axis=-1, keepdims=True)
    var2 = jnp.mean((y - mean2) ** 2, axis=-1, keepdims=True)
    y = (y - mean2) * jax.lax.rsqrt(var2 + EPS) * g2 + be2

    out_ref[...] = y.astype(out_ref.dtype)


def prepare_block_constants(params):
    """Init-time (hoisted) repacking of weights, biases and bookkeeping constants."""
    (wv, bv, wk, bk, wq, bq, wo, bo, g1, be1, g2, be2, w1, b1, w2, b2) = params
    E, H, D, N, S = EMBED, HEADS, HEAD_DIM, BATCH, SEQ
    NS, NHS = N * S, N * H * S
    scale = jnp.float32(E) ** 0.5

    # Zero-padded / fused weight slabs.
    wq_pad = jnp.zeros((E, WIDE), jnp.float32).at[:, 0:E].set(wq / scale)
    w_kv = (jnp.zeros((2 * E, WIDE), jnp.float32)
            .at[0:E, 0:E].set(wk)
            .at[E:2 * E, E:2 * E].set(wv))
    wo_pad = jnp.zeros((WIDE, E), jnp.float32).at[E:2 * E, :].set(wo)

    # Packed 1-D parameters.
    b128 = (jnp.zeros((8, WIDE), jnp.float32)
            .at[0, 0:E].set(bq / scale)
            .at[1, 0:E].set(bk)
            .at[1, E:2 * E].set(bv)
            .at[2, :].set(b1))
    b32 = (jnp.zeros((8, E), jnp.float32)
           .at[0].set(bo).at[1].set(g1).at[2].set(be1)
           .at[3].set(g2).at[4].set(be2).at[5].set(b2))

    # Bookkeeping constants encoding the per-(batch, head) block structure.
    c = jnp.arange(NHS)
    n_idx = c // (H * S)
    h_idx = (c // S) % H
    s_idx = c % S
    # dupT[(n*H+h)*S+s, n*S+s] = 1 : replicates K/V rows once per head.
    src = n_idx * S + s_idx
    dupT = (src[:, None] == jnp.arange(NS)[None, :]).astype(jnp.float32)          # (NHS, NS)
    # hmask[(n*H+h)*S+s, e] = 1 iff feature e belongs to head h.
    e_idx = jnp.arange(E)[None, :]
    hmask = ((e_idx >= (h_idx * D)[:, None]) &
             (e_idx < ((h_idx + 1) * D)[:, None])).astype(jnp.float32)            # (NHS, E)
    hmask2 = (jnp.zeros((NHS, WIDE), jnp.float32)
              .at[:, 0:E].set(hmask)          # K lane half
              .at[:, E:2 * E].set(hmask))     # V lane half

    return (dupT, hmask2, wq_pad, w_kv, wo_pad, w1, w2, b128, b32)


def _mask_bias(mask, N, S, H):
    """Additive f32 attention bias of shape (N*S, N*H*S): 0 attended, NEG_MASKED where
    mask==0, NEG_XBATCH for the cross-batch blocks created by folding batch into rows."""
    bias4 = jnp.where(mask == 0, jnp.float32(NEG_MASKED), jnp.float32(0.0))  # (N,H,Sq,Sk)
    same = jnp.eye(N, dtype=bool)
    big = jnp.where(same[:, None, :, None, None],
                    bias4.transpose(0, 2, 1, 3)[:, :, None, :, :],           # (N,Sq,1,H,Sk)
                    jnp.float32(NEG_XBATCH))                                 # (N,Sq,N',H,Sk)
    return big.reshape(N * S, N * H * mask.shape[-1])


def transformer_block(value, key, query, mask, consts):
    N, S, E = query.shape
    (dupT, hmask2, wq_pad, w_kv, wo_pad, w1, w2, b128, b32) = consts

    # Per-call glue only: fold batch into rows, lane-concatenate [key | value],
    # and build the additive attention bias from the mask.
    qf = query.reshape(N * S, E)
    kvf = jnp.concatenate([key.reshape(N * S, E), value.reshape(N * S, E)], axis=1)
    bias_all = _mask_bias(mask, N, S, HEADS)

    inputs = (qf, kvf, bias_all, dupT, hmask2, wq_pad, w_kv, wo_pad, w1, w2, b128, b32)
    vmem = pl.BlockSpec(memory_space=pltpu.MemorySpace.VMEM)
    out_flat = pl.pallas_call(
        transformer_block_kernel,
        out_shape=jax.ShapeDtypeStruct((N * S, E), jnp.float32),
        in_specs=[vmem] * len(inputs),
        out_specs=vmem,
    )(*inputs)
    return out_flat.reshape(N, S, E)


# ----------------------------- pure-JAX reference -----------------------------

def layer_norm_ref(x, g, b):
    mean = jnp.mean(x, axis=-1, keepdims=True)
    var = jnp.mean((x - mean) ** 2, axis=-1, keepdims=True)
    return (x - mean) * jax.lax.rsqrt(var + EPS) * g + b


def reference(value, key, query, mask, params):
    (wv, bv, wk, bk, wq, bq, wo, bo, g1, be1, g2, be2, w1, b1, w2, b2) = params
    N, S, E = query.shape
    V = value @ wv + bv
    K = key @ wk + bk
    Q = query @ wq + bq
    V = V.reshape(N, S, HEADS, HEAD_DIM)
    K = K.reshape(N, S, HEADS, HEAD_DIM)
    Q = Q.reshape(N, S, HEADS, HEAD_DIM)
    energy = jnp.einsum('nqhd,nkhd->nhqk', Q, K)
    energy = jnp.where(mask == 0, -1e20, energy)
    attn = jax.nn.softmax(energy / (E ** 0.5), axis=3)
    out = jnp.einsum('nhql,nlhd->nqhd', attn, V).reshape(N, S, E)
    out = out @ wo + bo
    x = layer_norm_ref(out + query, g1, be1)
    ff = jnp.maximum(x @ w1 + b1, 0.0) @ w2 + b2
    return layer_norm_ref(ff + x, g2, be2)


if __name__ == "__main__":
    root = jax.random.PRNGKey(0)
    ks = jax.random.split(root, 16)

    # Deterministic parameter init (weights already transposed: (in, out))
    def w(k, shape, scale=0.05):
        return (scale * jax.random.normal(k, shape)).astype(jnp.float32)

    wv = w(ks[0], (EMBED, EMBED)); bv = w(ks[1], (EMBED,))
    wk = w(ks[2], (EMBED, EMBED)); bk = w(ks[3], (EMBED,))
    wq = w(ks[4], (EMBED, EMBED)); bq = w(ks[5], (EMBED,))
    wo = w(ks[6], (EMBED, EMBED)); bo = w(ks[7], (EMBED,))
    g1 = jnp.ones((EMBED,), jnp.float32); be1 = jnp.zeros((EMBED,), jnp.float32)
    g2 = jnp.ones((EMBED,), jnp.float32); be2 = jnp.zeros((EMBED,), jnp.float32)
    w1 = w(ks[8], (EMBED, FFN)); b1 = w(ks[9], (FFN,))
    w2 = w(ks[10], (FFN, EMBED)); b2 = w(ks[11], (EMBED,))
    params = (wv, bv, wk, bk, wq, bq, wo, bo, g1, be1, g2, be2, w1, b1, w2, b2)

    # Hoisted once (parameter-prep time): repacked weights / packed biases / constants.
    consts = jax.tree_util.tree_map(jax.block_until_ready, prepare_block_constants(params))

    # Inputs
    value = jax.random.normal(ks[12], (BATCH, SEQ, EMBED), jnp.float32)
    key_in = jax.random.normal(ks[13], (BATCH, SEQ, EMBED), jnp.float32)
    query = jax.random.normal(ks[14], (BATCH, SEQ, EMBED), jnp.float32)

    # Causal mask, shape (N, heads, q_len, k_len); 0 => masked
    causal = jnp.tril(jnp.ones((SEQ, SEQ), jnp.int32))
    mask = jnp.broadcast_to(causal, (BATCH, HEADS, SEQ, SEQ)).astype(jnp.int32)

    run = jax.jit(transformer_block)
    out = run(value, key_in, query, mask, consts)
    out = jax.block_until_ready(out)

    ref = reference(value, key_in, query, mask, params)
    assert out.shape == (BATCH, SEQ, EMBED)
    # Tolerance accommodates the EUP approximate reciprocal in the softmax
    # normalization (~2^-12 relative); observed error is far below this bound.
    assert jnp.allclose(out, ref, rtol=2e-3, atol=2e-3), "mismatch vs pure-JAX reference"

    print("KERNEL_OK")
</pallas_src>

<mosaic_0001>
module attributes {stable_mosaic.version = 11 : i64} {
  func.func @transformer_block_kernel(%arg0: memref<16x32xf32, #tpu.memory_space<vmem>>, %arg1: memref<16x64xf32, #tpu.memory_space<vmem>>, %arg2: memref<16x64xf32, #tpu.memory_space<vmem>>, %arg3: memref<64x16xf32, #tpu.memory_space<vmem>>, %arg4: memref<64x128xf32, #tpu.memory_space<vmem>>, %arg5: memref<32x128xf32, #tpu.memory_space<vmem>>, %arg6: memref<64x128xf32, #tpu.memory_space<vmem>>, %arg7: memref<128x32xf32, #tpu.memory_space<vmem>>, %arg8: memref<32x128xf32, #tpu.memory_space<vmem>>, %arg9: memref<128x32xf32, #tpu.memory_space<vmem>>, %arg10: memref<8x128xf32, #tpu.memory_space<vmem>>, %arg11: memref<8x32xf32, #tpu.memory_space<vmem>>, %arg12: memref<16x32xf32, #tpu.memory_space<vmem>>) attributes {dimension_semantics = [], scalar_prefetch = 0 : i64, scratch_operands = 0 : i64, tpu.core_type = #tpu.core_type<tc>} {
    %c0 = arith.constant 0 : index
    %c0_0 = arith.constant 0 : index
    %0 = vector.load %arg0[%c0, %c0_0] : memref<16x32xf32, #tpu.memory_space<vmem>>, vector<16x32xf32>
    %c0_1 = arith.constant 0 : index
    %c0_2 = arith.constant 0 : index
    %1 = vector.load %arg10[%c0_1, %c0_2] : memref<8x128xf32, #tpu.memory_space<vmem>>, vector<1x128xf32>
    %c1 = arith.constant 1 : index
    %c0_3 = arith.constant 0 : index
    %2 = vector.load %arg10[%c1, %c0_3] : memref<8x128xf32, #tpu.memory_space<vmem>>, vector<1x128xf32>
    %c2 = arith.constant 2 : index
    %c0_4 = arith.constant 0 : index
    %3 = vector.load %arg10[%c2, %c0_4] : memref<8x128xf32, #tpu.memory_space<vmem>>, vector<1x128xf32>
    %c0_5 = arith.constant 0 : index
    %c0_6 = arith.constant 0 : index
    %4 = vector.load %arg11[%c0_5, %c0_6] : memref<8x32xf32, #tpu.memory_space<vmem>>, vector<1x32xf32>
    %c1_7 = arith.constant 1 : index
    %c0_8 = arith.constant 0 : index
    %5 = vector.load %arg11[%c1_7, %c0_8] : memref<8x32xf32, #tpu.memory_space<vmem>>, vector<1x32xf32>
    %c2_9 = arith.constant 2 : index
    %c0_10 = arith.constant 0 : index
    %6 = vector.load %arg11[%c2_9, %c0_10] : memref<8x32xf32, #tpu.memory_space<vmem>>, vector<1x32xf32>
    %c3 = arith.constant 3 : index
    %c0_11 = arith.constant 0 : index
    %7 = vector.load %arg11[%c3, %c0_11] : memref<8x32xf32, #tpu.memory_space<vmem>>, vector<1x32xf32>
    %c4 = arith.constant 4 : index
    %c0_12 = arith.constant 0 : index
    %8 = vector.load %arg11[%c4, %c0_12] : memref<8x32xf32, #tpu.memory_space<vmem>>, vector<1x32xf32>
    %c5 = arith.constant 5 : index
    %c0_13 = arith.constant 0 : index
    %9 = vector.load %arg11[%c5, %c0_13] : memref<8x32xf32, #tpu.memory_space<vmem>>, vector<1x32xf32>
    %c0_14 = arith.constant 0 : index
    %c0_15 = arith.constant 0 : index
    %10 = vector.load %arg5[%c0_14, %c0_15] : memref<32x128xf32, #tpu.memory_space<vmem>>, vector<32x128xf32>
    %cst = arith.constant dense<0.000000e+00> : vector<16x128xf32>
    %11 = tpu.matmul %0, %10, %cst {dimension_numbers = #tpu.dot_dimension_numbers<[1], [0], [0], [1], [0, 0, 1, 1], [], []>} : vector<16x32xf32>, vector<32x128xf32>, vector<16x128xf32> -> vector<16x128xf32>
    %12 = vector.broadcast %1 : vector<1x128xf32> to vector<16x128xf32>
    %13 = arith.addf %11, %12 : vector<16x128xf32>
    %c0_16 = arith.constant 0 : index
    %c0_17 = arith.constant 0 : index
    %14 = vector.load %arg1[%c0_16, %c0_17] : memref<16x64xf32, #tpu.memory_space<vmem>>, vector<16x64xf32>
    %c0_18 = arith.constant 0 : index
    %c0_19 = arith.constant 0 : index
    %15 = vector.load %arg6[%c0_18, %c0_19] : memref<64x128xf32, #tpu.memory_space<vmem>>, vector<64x128xf32>
    %cst_20 = arith.constant dense<0.000000e+00> : vector<16x128xf32>
    %16 = tpu.matmul %14, %15, %cst_20 {dimension_numbers = #tpu.dot_dimension_numbers<[1], [0], [0], [1], [0, 0, 1, 1], [], []>} : vector<16x64xf32>, vector<64x128xf32>, vector<16x128xf32> -> vector<16x128xf32>
    %17 = vector.broadcast %2 : vector<1x128xf32> to vector<16x128xf32>
    %18 = arith.addf %16, %17 : vector<16x128xf32>
    %c0_21 = arith.constant 0 : index
    %c0_22 = arith.constant 0 : index
    %19 = vector.load %arg4[%c0_21, %c0_22] : memref<64x128xf32, #tpu.memory_space<vmem>>, vector<64x128xf32>
    %c0_23 = arith.constant 0 : index
    %c0_24 = arith.constant 0 : index
    %20 = vector.load %arg3[%c0_23, %c0_24] : memref<64x16xf32, #tpu.memory_space<vmem>>, vector<64x16xf32>
    %cst_25 = arith.constant dense<0.000000e+00> : vector<64x128xf32>
    %21 = tpu.matmul %20, %18, %cst_25 {dimension_numbers = #tpu.dot_dimension_numbers<[1], [0], [0], [1], [0, 0, 1, 1], [], []>} : vector<64x16xf32>, vector<16x128xf32>, vector<64x128xf32> -> vector<64x128xf32>
    %22 = arith.mulf %21, %19 : vector<64x128xf32>
    %cst_26 = arith.constant dense<0.000000e+00> : vector<16x64xf32>
    %23 = tpu.matmul %13, %22, %cst_26 {dimension_numbers = #tpu.dot_dimension_numbers<[1], [1], [0], [0], [0, 0, 1, 0], [], []>} : vector<16x128xf32>, vector<64x128xf32>, vector<16x64xf32> -> vector<16x64xf32>
    %c0_27 = arith.constant 0 : index
    %c0_28 = arith.constant 0 : index
    %24 = vector.load %arg2[%c0_27, %c0_28] : memref<16x64xf32, #tpu.memory_space<vmem>>, vector<16x64xf32>
    %25 = arith.addf %23, %24 : vector<16x64xf32>
    %cst_29 = arith.constant dense<0xFF800000> : vector<16xf32>
    %26 = vector.multi_reduction <maximumf>, %25, %cst_29 [1] : vector<16x64xf32> to vector<16xf32>
    %27 = vector.shape_cast %26 : vector<16xf32> to vector<16x1xf32>
    %28 = vector.broadcast %27 : vector<16x1xf32> to vector<16x64xf32>
    %29 = arith.subf %25, %28 : vector<16x64xf32>
    %30 = math.exp %29 : vector<16x64xf32>
    %cst_30 = arith.constant dense<0.000000e+00> : vector<16x128xf32>
    %31 = tpu.matmul %30, %19, %cst_30 {dimension_numbers = #tpu.dot_dimension_numbers<[1], [0], [0], [1], [0, 0, 1, 1], [], []>} : vector<16x64xf32>, vector<64x128xf32>, vector<16x128xf32> -> vector<16x128xf32>
    %cst_31 = arith.constant 9.99999968E-21 : f32
    %32 = vector.broadcast %cst_31 : f32 to vector<16x128xf32>
    %33 = arith.maximumf %31, %32 : vector<16x128xf32>
    %cst_32 = arith.constant dense<0.000000e+00> : vector<16x128xf32>
    %34 = tpu.matmul %30, %22, %cst_32 {dimension_numbers = #tpu.dot_dimension_numbers<[1], [0], [0], [1], [0, 0, 1, 1], [], []>} : vector<16x64xf32>, vector<64x128xf32>, vector<16x128xf32> -> vector<16x128xf32>
    %35 = tpu.reciprocal %33 {approx = true} : vector<16x128xf32> -> vector<16x128xf32>
    %36 = arith.mulf %34, %35 : vector<16x128xf32>
    %c0_33 = arith.constant 0 : index
    %c0_34 = arith.constant 0 : index
    %37 = vector.load %arg7[%c0_33, %c0_34] : memref<128x32xf32, #tpu.memory_space<vmem>>, vector<128x32xf32>
    %cst_35 = arith.constant dense<0.000000e+00> : vector<16x32xf32>
    %38 = tpu.matmul %36, %37, %cst_35 {dimension_numbers = #tpu.dot_dimension_numbers<[1], [0], [0], [1], [0, 0, 1, 1], [], []>} : vector<16x128xf32>, vector<128x32xf32>, vector<16x32xf32> -> vector<16x32xf32>
    %39 = vector.broadcast %4 : vector<1x32xf32> to vector<16x32xf32>
    %40 = arith.addf %38, %39 : vector<16x32xf32>
    %41 = arith.addf %40, %0 : vector<16x32xf32>
    %cst_36 = arith.constant dense<0.000000e+00> : vector<16xf32>
    %42 = vector.multi_reduction <add>, %41, %cst_36 [1] : vector<16x32xf32> to vector<16xf32>
    %43 = vector.shape_cast %42 : vector<16xf32> to vector<16x1xf32>
    %cst_37 = arith.constant 3.200000e+01 : f32
    %44 = vector.broadcast %cst_37 : f32 to vector<16x1xf32>
    %45 = arith.divf %43, %44 : vector<16x1xf32>
    %46 = vector.broadcast %45 : vector<16x1xf32> to vector<16x32xf32>
    %47 = arith.subf %41, %46 : vector<16x32xf32>
    %48 = arith.mulf %47, %47 : vector<16x32xf32>
    %cst_38 = arith.constant dense<0.000000e+00> : vector<16xf32>
    %49 = vector.multi_reduction <add>, %48, %cst_38 [1] : vector<16x32xf32> to vector<16xf32>
    %50 = vector.shape_cast %49 : vector<16xf32> to vector<16x1xf32>
    %cst_39 = arith.constant 3.200000e+01 : f32
    %51 = vector.broadcast %cst_39 : f32 to vector<16x1xf32>
    %52 = arith.divf %50, %51 : vector<16x1xf32>
    %53 = vector.broadcast %45 : vector<16x1xf32> to vector<16x32xf32>
    %54 = arith.subf %41, %53 : vector<16x32xf32>
    %cst_40 = arith.constant 9.99999974E-6 : f32
    %55 = vector.broadcast %cst_40 : f32 to vector<16x1xf32>
    %56 = arith.addf %52, %55 : vector<16x1xf32>
    %57 = math.rsqrt %56 : vector<16x1xf32>
    %58 = vector.broadcast %57 : vector<16x1xf32> to vector<16x32xf32>
    %59 = arith.mulf %54, %58 : vector<16x32xf32>
    %60 = vector.broadcast %5 : vector<1x32xf32> to vector<16x32xf32>
    %61 = arith.mulf %59, %60 : vector<16x32xf32>
    %62 = vector.broadcast %6 : vector<1x32xf32> to vector<16x32xf32>
    %63 = arith.addf %61, %62 : vector<16x32xf32>
    %c0_41 = arith.constant 0 : index
    %c0_42 = arith.constant 0 : index
    %64 = vector.load %arg8[%c0_41, %c0_42] : memref<32x128xf32, #tpu.memory_space<vmem>>, vector<32x128xf32>
    %cst_43 = arith.constant dense<0.000000e+00> : vector<16x128xf32>
    %65 = tpu.matmul %63, %64, %cst_43 {dimension_numbers = #tpu.dot_dimension_numbers<[1], [0], [0], [1], [0, 0, 1, 1], [], []>} : vector<16x32xf32>, vector<32x128xf32>, vector<16x128xf32> -> vector<16x128xf32>
    %66 = vector.broadcast %3 : vector<1x128xf32> to vector<16x128xf32>
    %67 = arith.addf %65, %66 : vector<16x128xf32>
    %cst_44 = arith.constant 0.000000e+00 : f32
    %68 = vector.broadcast %cst_44 : f32 to vector<16x128xf32>
    %69 = arith.maximumf %67, %68 : vector<16x128xf32>
    %c0_45 = arith.constant 0 : index
    %c0_46 = arith.constant 0 : index
    %70 = vector.load %arg9[%c0_45, %c0_46] : memref<128x32xf32, #tpu.memory_space<vmem>>, vector<128x32xf32>
    %cst_47 = arith.constant dense<0.000000e+00> : vector<16x32xf32>
    %71 = tpu.matmul %69, %70, %cst_47 {dimension_numbers = #tpu.dot_dimension_numbers<[1], [0], [0], [1], [0, 0, 1, 1], [], []>} : vector<16x128xf32>, vector<128x32xf32>, vector<16x32xf32> -> vector<16x32xf32>
    %72 = vector.broadcast %9 : vector<1x32xf32> to vector<16x32xf32>
    %73 = arith.addf %71, %72 : vector<16x32xf32>
    %74 = arith.addf %73, %63 : vector<16x32xf32>
    %cst_48 = arith.constant dense<0.000000e+00> : vector<16xf32>
    %75 = vector.multi_reduction <add>, %74, %cst_48 [1] : vector<16x32xf32> to vector<16xf32>
    %76 = vector.shape_cast %75 : vector<16xf32> to vector<16x1xf32>
    %cst_49 = arith.constant 3.200000e+01 : f32
    %77 = vector.broadcast %cst_49 : f32 to vector<16x1xf32>
    %78 = arith.divf %76, %77 : vector<16x1xf32>
    %79 = vector.broadcast %78 : vector<16x1xf32> to vector<16x32xf32>
    %80 = arith.subf %74, %79 : vector<16x32xf32>
    %81 = arith.mulf %80, %80 : vector<16x32xf32>
    %cst_50 = arith.constant dense<0.000000e+00> : vector<16xf32>
    %82 = vector.multi_reduction <add>, %81, %cst_50 [1] : vector<16x32xf32> to vector<16xf32>
    %83 = vector.shape_cast %82 : vector<16xf32> to vector<16x1xf32>
    %cst_51 = arith.constant 3.200000e+01 : f32
    %84 = vector.broadcast %cst_51 : f32 to vector<16x1xf32>
    %85 = arith.divf %83, %84 : vector<16x1xf32>
    %86 = vector.broadcast %78 : vector<16x1xf32> to vector<16x32xf32>
    %87 = arith.subf %74, %86 : vector<16x32xf32>
    %cst_52 = arith.constant 9.99999974E-6 : f32
    %88 = vector.broadcast %cst_52 : f32 to vector<16x1xf32>
    %89 = arith.addf %85, %88 : vector<16x1xf32>
    %90 = math.rsqrt %89 : vector<16x1xf32>
    %91 = vector.broadcast %90 : vector<16x1xf32> to vector<16x32xf32>
    %92 = arith.mulf %87, %91 : vector<16x32xf32>
    %93 = vector.broadcast %7 : vector<1x32xf32> to vector<16x32xf32>
    %94 = arith.mulf %92, %93 : vector<16x32xf32>
    %95 = vector.broadcast %8 : vector<1x32xf32> to vector<16x32xf32>
    %96 = arith.addf %94, %95 : vector<16x32xf32>
    %c0_53 = arith.constant 0 : index
    %c0_54 = arith.constant 0 : index
    %97 = vector.load %arg12[%c0_53, %c0_54] : memref<16x32xf32, #tpu.memory_space<vmem>>, vector<16x32xf32>
    tpu.vector_store %arg12[%c0_53, %c0_54], %96 {strides = array<i32>} : memref<16x32xf32, #tpu.memory_space<vmem>>, vector<16x32xf32>,
    return
  }
}

</mosaic_0001>

<bundles_post_ra>
// kernel: transformer_block.1
= control target key start
LH: loop header
LB: loop body
LE: loop exit
PB: predicated region body
PF: predicated region fallthrough
CT: control target
= control target key end

     0   :  { %vm157_vm0 = vcmask 523264   ;;  %s1895_s0 = inlined_call_operand.vmem [shape: f32[16,32], index: 0, kind: input, shape index: {}]   ;;  %s1896_s1 = inlined_call_operand.vmem [shape: f32[16,64], index: 1, kind: input, shape index: {}]   ;;  %s1897_s2 = inlined_call_operand.vmem [shape: f32[16,64], index: 2, kind: input, shape index: {}]   ;;  %s1898_s3 = inlined_call_operand.vmem [shape: f32[64,16], index: 3, kind: input, shape index: {}]   ;;  %s1899_s4 = inlined_call_operand.vmem [shape: f32[64,128], index: 4, kind: input, shape index: {}]   ;;  %s1900_s5 = inlined_call_operand.vmem [shape: f32[32,128], index: 5, kind: input, shape index: {}]   ;;  %s1901_s6 = inlined_call_operand.vmem [shape: f32[64,128], index: 6, kind: input, shape index: {}]   ;;  %s1902_s7 = inlined_call_operand.vmem [shape: f32[128,32], index: 7, kind: input, shape index: {}]   ;;  %s1903_s8 = inlined_call_operand.vmem [shape: f32[32,128], index: 8, kind: input, shape index: {}]   ;;  %s1904_s9 = inlined_call_operand.vmem [shape: f32[128,32], index: 9, kind: input, shape index: {}]   ;;  %s1905_s10 = inlined_call_operand.vmem [shape: f32[8,128], index: 10, kind: input, shape index: {}]   ;;  %s1906_s11 = inlined_call_operand.vmem [shape: f32[8,32], index: 11, kind: input, shape index: {}]   ;;  %s1907_s12 = inlined_call_operand.hbm [shape: f32[16,32], index: 12, kind: output, shape index: {}]  }
   0x1   :  { %v145_v0 = vld [vmem:[%s1901_s6] sm:$0xff]  ;;  %v146_v1 = vld [vmem:[%s1901_s6 + $0x8] sm:$0xff]  ;;  %v147_v2 = vld [vmem:[%s1901_s6 + $0x10] sm:$0xff] }
   0x2   :  { %v1341_v3 = vpack.c.bf16 %v146_v1, %v145_v0  ;;  %v148_v4 = vld [vmem:[%s1901_s6 + $0x18] sm:$0xff]  ;;  %v149_v6 = vld [vmem:[%s1901_s6 + $0x20] sm:$0xff]  ;;  %v150_v7 = vld [vmem:[%s1901_s6 + $0x28] sm:$0xff] }
   0x3   :  { %v1345_v5 = vpack.c.bf16 %v148_v4, %v147_v2  ;;  %v143_v8 = vld [vmem:[%s1896_s1] sm:$0xff]  ;;  %v54_v10 = vld [vmem:[%s1900_s5 + $0x8] sm:$0xff] }
   0x4   :  { %1342 = vmatprep.subr.bf16.mxu1 %v1341_v3  ;;  %1176 = vmatprep.mubr.msk.f32.mxu1 %vm157_vm0, %v143_v8  ;;  %v53_v9 = vld [vmem:[%s1900_s5] sm:$0xff] }
   0x5   :  { %1344 = vmatpush3.bf16.msra.mxu1 %v1341_v3  ;;  %v1333_v11 = vpack.c.bf16 %v54_v10, %v53_v9 }
   0x6   :  { %17 = vsyncpa [#allocation3], 0  ;;  %1346 = vmatprep.subr.bf16.mxu1 %v1345_v5  ;;  %v1349_v12 = vpack.c.bf16 %v150_v7, %v149_v6  ;;  %v151_v13 = vld [vmem:[%s1901_s6 + $0x30] sm:$0xff]  ;;  %v152_v14 = vld [vmem:[%s1901_s6 + $0x38] sm:$0xff]  ;;  %vm61_vm1 = vcmask 261120   ;;  %vm255_vm2 = vcmask 130048  }
   0x7   :  { %1334 = vmatprep.subr.bf16.mxu0 %v1333_v11  ;;  %v1353_v15 = vpack.c.bf16 %v152_v14, %v151_v13  ;;  %v144_v16 = vld [vmem:[%s1896_s1 + $0x8] sm:$0xff]  ;;  %v55_v17 = vld [vmem:[%s1900_s5 + $0x10] sm:$0xff]  ;;  %v56_v18 = vld [vmem:[%s1900_s5 + $0x18] sm:$0xff]  ;;  %s1524_s14 = smov [#allocation2]  }
   0x8   :  { %1336 = vmatpush3.bf16.msra.mxu0 %v1333_v11  ;;  %v1337_v19 = vpack.c.bf16 %v56_v18, %v55_v17  ;;  %v1639_v20 = vld [vmem:[%s1895_s0] sm:$0xff]  ;;  %v1646_v21 = vld [vmem:[%s1895_s0 + $0x8] sm:$0xff]  ;;  %v241_v26 = vld [vmem:[%s1899_s4 + $0x10] sm:$0xff] }
   0x9   :  { %1348 = vmatpush3.bf16.msra.mxu1 %v1345_v5  ;;  %1157 = vmatprep.mubr.msk.f32.mxu0 %vm61_vm1, %v1639_v20  ;;  %v247_v22 = vld [vmem:[%s1898_s3] sm:$0xff]  ;;  %v240_v24 = vld [vmem:[%s1899_s4 + $0x8] sm:$0xff]  ;;  %v242_v27 = vld [vmem:[%s1899_s4 + $0x18] sm:$0xff] }
   0xa   :  { %1350 = vmatprep.subr.bf16.mxu1 %v1349_v12  ;;  %1338 = vmatprep.subr.bf16.mxu0 %v1337_v19  ;;  %v239_v23 = vld [vmem:[%s1899_s4] sm:$0xff]  ;;  %v1381_v28 = vpack.c.bf16 %v242_v27, %v241_v26  ;;  %v248_v35 = vld [vmem:[%s1898_s3 + $0x8] sm:$0xff]  ;;  %v249_v36 = vld [vmem:[%s1898_s3 + $0x10] sm:$0xff] }
   0xb   :  { %v1377_v25 = vpack.c.bf16 %v240_v24, %v239_v23  ;;  %v1027_v29 = vld [vmem:[%s1905_s10 + $0x1] ss:$0 sm:$0xff]  ;;  %v250_v37 = vld [vmem:[%s1898_s3 + $0x18] sm:$0xff]  ;;  %v252_v39 = vld [vmem:[%s1898_s3 + $0x28] sm:$0xff] }
   0xc   :  { %1340 = vmatpush3.bf16.msra.mxu0 %v1337_v19  ;;  %v251_v38 = vld [vmem:[%s1898_s3 + $0x20] sm:$0xff]  ;;  %v253_v40 = vld [vmem:[%s1898_s3 + $0x30] sm:$0xff]  ;;  %v254_v41 = vld [vmem:[%s1898_s3 + $0x38] sm:$0xff] }
   0xd   :  { %1352 = vmatpush3.bf16.msra.mxu1 %v1349_v12  ;;  %v1024_v42 = vld [vmem:[%s1905_s10] ss:$0 sm:$0xff]  ;;  %v244_v48 = vld [vmem:[%s1899_s4 + $0x28] sm:$0xff]  ;;  %v245_v50 = vld [vmem:[%s1899_s4 + $0x30] sm:$0xff] }
   0xe   :  { %1354 = vmatprep.subr.bf16.mxu1 %v1353_v15  ;;  %v243_v47 = vld [vmem:[%s1899_s4 + $0x20] sm:$0xff]  ;;  %v246_v51 = vld [vmem:[%s1899_s4 + $0x38] sm:$0xff]  ;;  %v394_v11 = vld [vmem:[%s1897_s2 + $0x8] sm:$0xff] }
   0xf   :  { %1158 = vmatmul.mubr.msk.f32.vlgmr.msra.gmra.mrb[0].mxu0 %vm61_vm1, %v1646_v21  ;;  %v1385_v49 = vpack.c.bf16 %v244_v48, %v243_v47  ;;  %v1389_v52 = vpack.c.bf16 %v246_v51, %v245_v50  ;;  %v393_v9 = vld [vmem:[%s1897_s2] sm:$0xff]  ;;  %v645_v18 = vld [vmem:[%s1902_s7 + $0x8] sm:$0xff]  ;;  %v646_v19 = vld [vmem:[%s1902_s7 + $0x10] sm:$0xff]  ;;  %s1013_s2 = sshll.u32 %s1524_s14, 4  ;;  %s1014_s2 = int_to_ptr.vmem [resolvable:$true] %s1013_s2 }
  0x10   :  { %1183 = vmatprep.mubr.msk.f32.mxu0 %vm255_vm2, %v247_v22  ;;  %v644_v17 = vld [vmem:[%s1902_s7] sm:$0xff]  ;;  %s1500_s5 = scalar_lea.vmem %s1014_s2, 256  ;;  %p1505_p1 = scmp.lt.s32.totalorder %s1014_s2, %s1014_s2 }
  0x11   :  { %1356 = vmatpush3.bf16.msra.mxu1 %v1353_v15  ;;  %v1409_v22 = vpack.c.bf16 %v645_v18, %v644_v17  ;;  %v782_v17 = vld [vmem:[%s1903_s8 + $0x10] sm:$0xff]  ;;  %v783_v18 = vld [vmem:[%s1903_s8 + $0x18] sm:$0xff]  ;;  %p1501_p0 = scmp.ne.s32.totalorder %s1014_s2, %s1500_s5  ;;  %p1506_p2 = scmp.lt.s32.totalorder %s1500_s5, %s1500_s5 }
  0x12   :  { %1378 = vmatprep.subr.bf16.mxu1 %v1377_v25 }
  0x13   :  { %p1507_p3 = por %p1506_p2, %p1505_p1 }
  0x14   :  { %1177 = vmatmul.mubr.msk.f32.vlgmr.msra.gmra.mrb[0].mxu1 %vm157_vm0, %v144_v16 }
  0x15   :  { %1380 = vmatpush3.bf16.msra.mxu1 %v1377_v25  ;;  %v648_v25 = vld [vmem:[%s1902_s7 + $0x20] sm:$0xff]  ;;  %p1508_p4 = pnand %p1507_p3, %p1501_p0 }
  0x16   :  { %1382 = vmatprep.subr.bf16.mxu1 %v1381_v28 }
  0x19   :  { %1384 = vmatpush3.bf16.msra.mxu1 %v1381_v28 }
  0x1a   :  { %1386 = vmatprep.subr.bf16.mxu1 %v1385_v49 }
  0x1d   :  { %1388 = vmatpush3.bf16.msra.mxu1 %v1385_v49  ;;  %v659_v49 = vld [vmem:[%s1902_s7 + $0x78] sm:$0xff] }
  0x1e   :  { %1390 = vmatprep.subr.bf16.mxu1 %v1389_v52 }
  0x21   :  { %1392 = vmatpush3.bf16.msra.mxu1 %v1389_v52 }
  0xe2   :  { %v1159_v43 = vpop.f32.mrb[0].mxu0 }
  0xe3   :  { %v140_v44 = vadd.f32 %v1159_v43, %v1024_v42  ;;  %v134_v45 = vpop.f32.mrb[1].mxu0  ;;  %v655_v43 = vld [vmem:[%s1902_s7 + $0x58] sm:$0xff] }
  0xe4   :  { %v135_v46 = vadd.f32 %v1024_v42, %v134_v45  ;;  %v654_v42 = vld [vmem:[%s1902_s7 + $0x50] sm:$0xff] }
  0xe5   :  { %v1429_v45 = vpack.c.bf16 %v655_v43, %v654_v42 }
  0xe7   :  { %v1178_v30 = vpop.f32.mrb[0].mxu1 }
  0xe8   :  { %v236_v31 = vadd.f32 %v1178_v30, %v1027_v29  ;;  %v230_v32 = vpop.f32.mrb[1].mxu1 }
  0xe9   :  { %v231_v33 = vadd.f32 %v1027_v29, %v230_v32 }
  0xeb   :  { %v1357_v34 = vpack.c.bf16 %v236_v31, %v231_v33 }
  0xed   :  { %1358 = vmatprep.subr.bf16.mxu0 %v1357_v34 }
  0xee   :  { %1360 = vmatpush3.bf16.msra.mxu0 %v1357_v34 }
  0xf1   :  { %1184 = vmatmul.mubr.msk.f32.vlgmr.msra.gmra.mrb[2].mxu0 %vm255_vm2, %v248_v35 }
  0xf2   :  { %1186 = vmatprep.mubr.msk.f32.mxu0 %vm255_vm2, %v249_v36  ;;  %v650_v36 = vld [vmem:[%s1902_s7 + $0x30] sm:$0xff] }
  0xf5   :  { %1187 = vmatmul.mubr.msk.f32.gmra.mrb[4].mxu0 %vm255_vm2, %v250_v37  ;;  %v651_v37 = vld [vmem:[%s1902_s7 + $0x38] sm:$0xff] }
  0xf6   :  { %1189 = vmatprep.mubr.msk.f32.mxu0 %vm255_vm2, %v251_v38  ;;  %v1421_v38 = vpack.c.bf16 %v651_v37, %v650_v36  ;;  %v881_v37 = vld [vmem:[%s1904_s9 + $0x50] sm:$0xff] }
  0xf9   :  { %1190 = vmatmul.mubr.msk.f32.gmra.mrb[6].mxu0 %vm255_vm2, %v252_v39  ;;  %v652_v39 = vld [vmem:[%s1902_s7 + $0x40] sm:$0xff] }
  0xfa   :  { %1192 = vmatprep.mubr.msk.f32.mxu0 %vm255_vm2, %v253_v40  ;;  %v653_v40 = vld [vmem:[%s1902_s7 + $0x48] sm:$0xff] }
  0xfd   :  { %1193 = vmatmul.mubr.msk.f32.gmra.mrb[8].mxu0 %vm255_vm2, %v254_v41  ;;  %v1425_v41 = vpack.c.bf16 %v653_v40, %v652_v39  ;;  %v883_v40 = vld [vmem:[%s1904_s9 + $0x60] sm:$0xff] }
  0xfe   :  { %1211 = vmatprep.mubr.f32.mxu0 %v135_v46  ;;  %v657_v46 = vld [vmem:[%s1902_s7 + $0x68] sm:$0xff] }
 0x1c4   :  { %v1185_v53 = vpop.f32.mrb[2].mxu0 }
 0x1c5   :  { %v386_v54 = vmul.f32 %v1185_v53, %v240_v24  ;;  %v346_v55 = vpop.f32.mrb[3].mxu0 }
 0x1c6   :  { %v385_v56 = vmul.f32 %v346_v55, %v239_v23  ;;  %v647_v23 = vld [vmem:[%s1902_s7 + $0x18] sm:$0xff] }
 0x1c7   :  { %v1413_v24 = vpack.c.bf16 %v647_v23, %v646_v19  ;;  %v1445_v19 = vpack.c.bf16 %v783_v18, %v782_v17  ;;  %v872_v23 = vld [vmem:[%s1904_s9 + $0x8] sm:$0xff] }
 0x1c8   :  { %v1712_v57 = vpack.c.bf16 %v386_v54, %v385_v56  ;;  %v1188_v58 = vpop.f32.mrb[4].mxu0 }
 0x1c9   :  { %v388_v59 = vmul.f32 %v1188_v58, %v242_v27  ;;  %v356_v60 = vpop.f32.mrb[5].mxu0 }
 0x1ca   :  { %1362 = vmatprep.subr.bf16.mxu0 %v1712_v57  ;;  %1394 = vmatprep.subr.bf16.mxu1 %v1712_v57  ;;  %v387_v61 = vmul.f32 %v356_v60, %v241_v26  ;;  %v649_v26 = vld [vmem:[%s1902_s7 + $0x28] sm:$0xff] }
 0x1cb   :  { %1364 = vmatpush3.bf16.xpose.msra.mxu0 %v1712_v57  ;;  %v1417_v27 = vpack.c.bf16 %v649_v26, %v648_v25  ;;  %v874_v26 = vld [vmem:[%s1904_s9 + $0x18] sm:$0xff] }
 0x1cc   :  { %v1365_v62 = vpack.c.bf16 %v388_v59, %v387_v61  ;;  %v1191_v63 = vpop.f32.mrb[6].mxu0  ;;  %v1042_v61 = vld [vmem:[%s1906_s11] ss:$0 sm:$0xff] }
 0x1cd   :  { %v390_v0 = vmul.f32 %v1191_v63, %v244_v48  ;;  %v366_v1 = vpop.f32.mrb[7].mxu0  ;;  %v658_v48 = vld [vmem:[%s1902_s7 + $0x70] sm:$0xff] }
 0x1ce   :  { %1366 = vmatprep.subr.bf16.mxu0 %v1365_v62  ;;  %v389_v2 = vmul.f32 %v366_v1, %v243_v47 }
 0x1d0   :  { %v1369_v3 = vpack.c.bf16 %v390_v0, %v389_v2  ;;  %v1194_v4 = vpop.f32.mrb[8].mxu0 }
 0x1d1   :  { %v392_v5 = vmul.f32 %v1194_v4, %v246_v51  ;;  %v376_v6 = vpop.f32.mrb[9].mxu0 }
 0x1d2   :  { %v391_v7 = vmul.f32 %v376_v6, %v245_v50  ;;  %v1437_v50 = vpack.c.bf16 %v659_v49, %v658_v48 }
 0x1d3   :  { %1368 = vmatpush3.bf16.xpose.msra.mxu0 %v1365_v62 }
 0x1d4   :  { %1370 = vmatprep.subr.bf16.mxu0 %v1369_v3  ;;  %v1373_v8 = vpack.c.bf16 %v392_v5, %v391_v7 }
 0x1db   :  { %1372 = vmatpush3.bf16.xpose.msra.mxu0 %v1369_v3 }
 0x1dc   :  { %1374 = vmatprep.subr.bf16.mxu0 %v1373_v8 }
 0x1e3   :  { %1376 = vmatpush3.bf16.xpose.msra.mxu0 %v1373_v8 }
 0x1e4   :  { %1410 = vmatprep.subr.bf16.mxu0 %v1409_v22 }
 0x1ea   :  { %1212 = vmatmul.mubr.f32.vlgmr.msra.gmra.mrb[10].mxu0 %v140_v44  ;;  %v656_v44 = vld [vmem:[%s1902_s7 + $0x60] sm:$0xff] }
 0x1eb   :  { %1412 = vmatpush3.bf16.msra.mxu0 %v1409_v22  ;;  %v1433_v47 = vpack.c.bf16 %v657_v46, %v656_v44  ;;  %v871_v22 = vld [vmem:[%s1904_s9] sm:$0xff] }
 0x1ec   :  { %1414 = vmatprep.subr.bf16.mxu0 %v1413_v24  ;;  %v1449_v25 = vpack.c.bf16 %v872_v23, %v871_v22 }
 0x1ef   :  { %1416 = vmatpush3.bf16.msra.mxu0 %v1413_v24  ;;  %v873_v24 = vld [vmem:[%s1904_s9 + $0x10] sm:$0xff] }
 0x1f0   :  { %1418 = vmatprep.subr.bf16.mxu0 %v1417_v27 }
 0x1f3   :  { %1420 = vmatpush3.bf16.msra.mxu0 %v1417_v27  ;;  %v1453_v27 = vpack.c.bf16 %v874_v26, %v873_v24 }
 0x1f4   :  { %1422 = vmatprep.subr.bf16.mxu0 %v1421_v38 }
 0x1f7   :  { %1424 = vmatpush3.bf16.msra.mxu0 %v1421_v38  ;;  %v882_v38 = vld [vmem:[%s1904_s9 + $0x58] sm:$0xff] }
 0x1f8   :  { %1426 = vmatprep.subr.bf16.mxu0 %v1425_v41  ;;  %v1469_v39 = vpack.c.bf16 %v882_v38, %v881_v37 }
 0x1fb   :  { %1428 = vmatpush3.bf16.msra.mxu0 %v1425_v41  ;;  %v884_v41 = vld [vmem:[%s1904_s9 + $0x68] sm:$0xff] }
 0x1fc   :  { %1430 = vmatprep.subr.bf16.mxu0 %v1429_v45  ;;  %v1473_v42 = vpack.c.bf16 %v884_v41, %v883_v40 }
 0x1ff   :  { %1432 = vmatpush3.bf16.msra.mxu0 %v1429_v45 }
 0x200   :  { %1434 = vmatprep.subr.bf16.mxu0 %v1433_v47 }
 0x203   :  { %1436 = vmatpush3.bf16.msra.mxu0 %v1433_v47 }
 0x204   :  { %1438 = vmatprep.subr.bf16.mxu0 %v1437_v50 }
 0x207   :  { %1440 = vmatpush3.bf16.msra.mxu0 %v1437_v50  ;;  %v1043_v50 = vld [vmem:[%s1906_s11 + $0x1] ss:$0 sm:$0xff] }
 0x2bd   :  { %v1213_v10 = vpop.f32.mrb[10].mxu0 }
 0x2be   :  { %v461_v12 = vpop.f32.mrb[11].mxu0  ;;  %v467_v14 = vadd.f32 %v1213_v10, %v394_v11 }
 0x2bf   :  { %v462_v13 = vadd.f32 %v461_v12, %v393_v9 }
 0x2c0   :  { %v473_v16 = vsel %vm157_vm0, %v467_v14, -inf }
 0x2c1   :  { %v470_v15 = vsel %vm157_vm0, %v462_v13, -inf }
 0x2c2   :  { %471 = vmax.xlane.f32.xlu0 %v470_v15  ;;  %v781_v15 = vld [vmem:[%s1903_s8 + $0x8] sm:$0xff] }
 0x2c6   :  { %474 = vmax.xlane.f32.xlu0 %v473_v16 }
 0x34f   :  { %v472_v28 = vpop.xlane.xlu0 %471 }
 0x350   :  { %v476_v29 = vsub.f32 %v462_v13, %v472_v28  ;;  %v875_v28 = vld [vmem:[%s1904_s9 + $0x20] sm:$0xff] }
 0x352   :  { %v478_v30 = vmul.f32 1.442695, %v476_v29  ;;  %v876_v29 = vld [vmem:[%s1904_s9 + $0x28] sm:$0xff] }
 0x353   :  { %v475_v31 = vpop.xlane.xlu0 %474 }
 0x354   :  { %1484 = vpow2.f32 %v478_v30  ;;  %v477_v32 = vsub.f32 %v467_v14, %v475_v31  ;;  %v780_v14 = vld [vmem:[%s1903_s8] sm:$0xff]  ;;  %v1457_v30 = vpack.c.bf16 %v876_v29, %v875_v28  ;;  %v877_v31 = vld [vmem:[%s1904_s9 + $0x30] sm:$0xff] }
 0x355   :  { %v1441_v16 = vpack.c.bf16 %v781_v15, %v780_v14 }
 0x356   :  { %v480_v33 = vmul.f32 1.442695, %v477_v32  ;;  %v878_v32 = vld [vmem:[%s1904_s9 + $0x38] sm:$0xff] }
 0x357   :  { %1442 = vmatprep.subr.bf16.mxu0 %v1441_v16 }
 0x358   :  { %1486 = vpow2.f32 %v480_v33  ;;  %v1461_v33 = vpack.c.bf16 %v878_v32, %v877_v31  ;;  %v1049_v31 = vld [vmem:[%s1906_s11 + $0x3] ss:$0 sm:$0xff] }
 0x35e   :  { %v1485_v34 = vpop.eup %1484 }
 0x35f   :  { %1230 = vmatprep.mubr.msk.f32.mxu1 %vm157_vm0, %v1485_v34 }
 0x362   :  { %v1487_v35 = vpop.eup %1486 }
 0x363   :  { %1231 = vmatmul.mubr.msk.f32.vlgmr.msra.gmra.mrb[2].mxu1 %vm157_vm0, %v1487_v35 }
 0x364   :  { %1396 = vmatpush3.bf16.msra.mxu1 %v1712_v57  ;;  %1249 = vmatprep.mubr.msk.f32.mxu1 %vm157_vm0, %v1485_v34  ;;  %v879_v34 = vld [vmem:[%s1904_s9 + $0x40] sm:$0xff] }
 0x365   :  { %1398 = vmatprep.subr.bf16.mxu1 %v1365_v62 }
 0x368   :  { %1400 = vmatpush3.bf16.msra.mxu1 %v1365_v62 }
 0x369   :  { %1402 = vmatprep.subr.bf16.mxu1 %v1369_v3 }
 0x36c   :  { %1404 = vmatpush3.bf16.msra.mxu1 %v1369_v3 }
 0x36d   :  { %1406 = vmatprep.subr.bf16.mxu1 %v1373_v8 }
 0x370   :  { %1408 = vmatpush3.bf16.msra.mxu1 %v1373_v8 }
 0x371   :  { %1450 = vmatprep.subr.bf16.mxu1 %v1449_v25 }
 0x373   :  { %1250 = vmatmul.mubr.msk.f32.vlgmr.msra.gmra.mrb[4].mxu1 %vm157_vm0, %v1487_v35  ;;  %v880_v35 = vld [vmem:[%s1904_s9 + $0x48] sm:$0xff] }
 0x374   :  { %1452 = vmatpush3.bf16.msra.mxu1 %v1449_v25  ;;  %v1465_v36 = vpack.c.bf16 %v880_v35, %v879_v34  ;;  %v1050_v35 = vld [vmem:[%s1906_s11 + $0x4] ss:$0 sm:$0xff] }
 0x375   :  { %1454 = vmatprep.subr.bf16.mxu1 %v1453_v27 }
 0x378   :  { %1456 = vmatpush3.bf16.msra.mxu1 %v1453_v27 }
 0x379   :  { %1458 = vmatprep.subr.bf16.mxu1 %v1457_v30 }
 0x37c   :  { %1460 = vmatpush3.bf16.msra.mxu1 %v1457_v30 }
 0x37d   :  { %1462 = vmatprep.subr.bf16.mxu1 %v1461_v33 }
 0x380   :  { %1464 = vmatpush3.bf16.msra.mxu1 %v1461_v33 }
 0x381   :  { %1466 = vmatprep.subr.bf16.mxu1 %v1465_v36 }
 0x384   :  { %1468 = vmatpush3.bf16.msra.mxu1 %v1465_v36 }
 0x385   :  { %1470 = vmatprep.subr.bf16.mxu1 %v1469_v39 }
 0x388   :  { %1472 = vmatpush3.bf16.msra.mxu1 %v1469_v39 }
 0x389   :  { %1474 = vmatprep.subr.bf16.mxu1 %v1473_v42 }
 0x38c   :  { %1476 = vmatpush3.bf16.msra.mxu1 %v1473_v42 }
 0x436   :  { %v1232_v51 = vpop.f32.mrb[2].mxu1 }
 0x437   :  { %v554_v52 = vpop.f32.mrb[3].mxu1  ;;  %v564_v53 = vmax.f32 %v1232_v51, 1e-20 }
 0x438   :  { %v563_v54 = vmax.f32 %v554_v52, 1e-20  ;;  %v1044_v52 = vld [vmem:[%s1906_s11 + $0x2] ss:$0 sm:$0xff] }
 0x439   :  { %1488 = vrcp.f32 %v564_v53 }
 0x43a   :  { %1490 = vrcp.f32 %v563_v54 }
 0x443   :  { %v1489_v55 = vpop.eup %1488 }
 0x444   :  { %v1491_v57 = vpop.eup %1490 }
 0x446   :  { %v1251_v56 = vpop.f32.mrb[4].mxu1 }
 0x447   :  { %v643_v58 = vmul.f32 %v1489_v55, %v1251_v56  ;;  %v631_v59 = vpop.f32.mrb[5].mxu1 }
 0x448   :  { %v642_v60 = vmul.f32 %v1491_v57, %v631_v59  ;;  %v885_v59 = vld [vmem:[%s1904_s9 + $0x70] sm:$0xff] }
 0x44a   :  { %1284 = vmatprep.mubr.f32.mxu0 %v642_v60  ;;  %v886_v60 = vld [vmem:[%s1904_s9 + $0x78] sm:$0xff] }
 0x44b   :  { %1285 = vmatmul.mubr.f32.vlgmr.msra.gmra.mrb[12].mxu0 %v643_v58 }
 0x44c   :  { %1444 = vmatpush3.bf16.msra.mxu0 %v1441_v16 }
 0x44d   :  { %1446 = vmatprep.subr.bf16.mxu0 %v1445_v19 }
 0x450   :  { %1448 = vmatpush3.bf16.msra.mxu0 %v1445_v19 }
 0x51e   :  { %v1286_v62 = vpop.f32.mrb[12].mxu0 }
 0x51f   :  { %v730_v63 = vpop.f32.mrb[13].mxu0  ;;  %v736_v0 = vadd.f32 %v1286_v62, %v1042_v61  ;;  %v1045_v62 = vld [vmem:[%s1905_s10 + $0x2] ss:$0 sm:$0xff] }
 0x520   :  { %v731_v1 = vadd.f32 %v1042_v61, %v730_v63  ;;  %v1477_v61 = vpack.c.bf16 %v886_v60, %v885_v59 }
 0x521   :  { %v740_v4 = vadd.f32 %v736_v0, %v1646_v21 }
 0x522   :  { %v739_v2 = vadd.f32 %v731_v1, %v1639_v20  ;;  %1478 = vmatprep.subr.bf16.mxu1 %v1477_v61 }
 0x523   :  { %v744_v5 = vsel %vm61_vm1, %v740_v4, 0.0  ;;  %1480 = vmatpush3.bf16.msra.mxu1 %v1477_v61 }
 0x524   :  { %v741_v3 = vsel %vm61_vm1, %v739_v2, 0.0 }
 0x525   :  { %742 = vadd.xlane.f32.xlu1 %v741_v3 }
 0x529   :  { %745 = vadd.xlane.f32.xlu1 %v744_v5  ;;  %v1048_v5 = vld [vmem:[%s1906_s11 + $0x5] ss:$0 sm:$0xff] }
 0x5b2   :  { %v743_v6 = vpop.xlane.xlu1 %742 }
 0x5b3   :  { %v748_v7 = vmul.f32 0.03125, %v743_v6 }
 0x5b5   :  { %v1785_v8 = vsub.f32 %v739_v2, %v748_v7 }
 0x5b6   :  { %v746_v9 = vpop.xlane.xlu1 %745 }
 0x5b7   :  { %v749_v10 = vmul.f32 0.03125, %v746_v9  ;;  %v752_v11 = vmul.f32 %v1785_v8, %v1785_v8 }
 0x5b9   :  { %v1789_v12 = vsub.f32 %v740_v4, %v749_v10  ;;  %v754_v20 = vsel %vm61_vm1, %v752_v11, 0.0 }
 0x5ba   :  { %755 = vadd.xlane.f32.xlu0 %v754_v20 }
 0x5bb   :  { %v753_v21 = vmul.f32 %v1789_v12, %v1789_v12 }
 0x5bd   :  { %v757_v13 = vsel %vm61_vm1, %v753_v21, 0.0 }
 0x5be   :  { %758 = vadd.xlane.f32.xlu1 %v757_v13 }
 0x647   :  { %v756_v43 = vpop.xlane.xlu0 %755 }
 0x648   :  { %v760_v44 = vmul.f32 0.03125, %v756_v43 }
 0x64a   :  { %v762_v45 = vadd.f32 1e-05, %v760_v44 }
 0x64b   :  { %v759_v46 = vpop.xlane.xlu1 %758 }
 0x64c   :  { %1492 = vrsqrt.f32 %v762_v45  ;;  %v761_v47 = vmul.f32 0.03125, %v759_v46 }
 0x64e   :  { %v763_v48 = vadd.f32 1e-05, %v761_v47 }
 0x650   :  { %1494 = vrsqrt.f32 %v763_v48 }
 0x656   :  { %v1493_v49 = vpop.eup %1492 }
 0x657   :  { %v766_v51 = vmul.f32 %v1493_v49, %v1785_v8 }
 0x659   :  { %v772_v53 = vmul.f32 %v1043_v50, %v766_v51 }
 0x65a   :  { %v1495_v54 = vpop.eup %1494 }
 0x65b   :  { %v767_v55 = vmul.f32 %v1495_v54, %v1789_v12  ;;  %v778_v56 = vadd.f32 %v1044_v52, %v772_v53 }
 0x65d   :  { %v773_v57 = vmul.f32 %v1043_v50, %v767_v55  ;;  %1295 = vmatprep.mubr.msk.f32.mxu0 %vm61_vm1, %v778_v56 }
 0x65f   :  { %v779_v58 = vadd.f32 %v1044_v52, %v773_v57 }
 0x661   :  { %1296 = vmatmul.mubr.msk.f32.vlgmr.msra.gmra.mrb[14].mxu0 %vm61_vm1, %v779_v58 }
 0x734   :  { %v1297_v63 = vpop.f32.mrb[14].mxu0 }
 0x735   :  { %v866_v0 = vadd.f32 %v1297_v63, %v1045_v62  ;;  %v860_v1 = vpop.f32.mrb[15].mxu0 }
 0x736   :  { %v861_v2 = vadd.f32 %v1045_v62, %v860_v1 }
 0x737   :  { %v870_v4 = vmax.f32 %v866_v0, 0.0 }
 0x738   :  { %v869_v3 = vmax.f32 %v861_v2, 0.0 }
 0x73a   :  { %1330 = vmatprep.mubr.f32.mxu1 %v869_v3 }
 0x73b   :  { %1331 = vmatmul.mubr.f32.vlgmr.msra.gmra.mrb[6].mxu1 %v870_v4 }
 0x80e   :  { %v1332_v6 = vpop.f32.mrb[6].mxu1 }
 0x80f   :  { %v963_v7 = vadd.f32 %v1332_v6, %v1048_v5  ;;  %v957_v8 = vpop.f32.mrb[7].mxu1 }
 0x810   :  { %v958_v9 = vadd.f32 %v1048_v5, %v957_v8 }
 0x811   :  { %v967_v10 = vadd.f32 %v963_v7, %v779_v58 }
 0x812   :  { %v966_v11 = vadd.f32 %v958_v9, %v778_v56 }
 0x813   :  { %v971_v12 = vsel %vm61_vm1, %v967_v10, 0.0 }
 0x814   :  { %972 = vadd.xlane.f32.xlu1 %v971_v12  ;;  %v968_v20 = vsel %vm61_vm1, %v966_v11, 0.0 }
 0x815   :  { %969 = vadd.xlane.f32.xlu0 %v968_v20 }
 0x8a1   :  { %v973_v21 = vpop.xlane.xlu1 %972 }
 0x8a2   :  { %v975_v13 = vmul.f32 0.03125, %v973_v21  ;;  %v970_v14 = vpop.xlane.xlu0 %969 }
 0x8a3   :  { %v974_v15 = vmul.f32 0.03125, %v970_v14 }
 0x8a4   :  { %v977_v16 = vsub.f32 %v967_v10, %v975_v13 }
 0x8a5   :  { %v976_v17 = vsub.f32 %v966_v11, %v974_v15 }
 0x8a6   :  { %v979_v18 = vmul.f32 %v977_v16, %v977_v16 }
 0x8a7   :  { %v978_v19 = vmul.f32 %v976_v17, %v976_v17 }
 0x8a8   :  { %v983_v22 = vsel %vm61_vm1, %v979_v18, 0.0 }
 0x8a9   :  { %984 = vadd.xlane.f32.xlu1 %v983_v22  ;;  %v980_v23 = vsel %vm61_vm1, %v978_v19, 0.0 }
 0x8aa   :  { %981 = vadd.xlane.f32.xlu0 %v980_v23 }
 0x936   :  { %v985_v24 = vpop.xlane.xlu1 %984 }
 0x937   :  { %v987_v25 = vmul.f32 0.03125, %v985_v24  ;;  %v982_v26 = vpop.xlane.xlu0 %981 }
 0x938   :  { %v986_v27 = vmul.f32 0.03125, %v982_v26 }
 0x939   :  { %v989_v28 = vadd.f32 1e-05, %v987_v25 }
 0x93a   :  { %v988_v29 = vadd.f32 1e-05, %v986_v27 }
 0x93b   :  { %1496 = vrsqrt.f32 %v989_v28 }
 0x93c   :  { %1498 = vrsqrt.f32 %v988_v29 }
 0x945   :  { %v1497_v30 = vpop.eup %1496 }
 0x946   :  { %v1499_v32 = vpop.eup %1498  ;;  %v993_v33 = vmul.f32 %v1497_v30, %v977_v16 }
 0x947   :  { %v992_v34 = vmul.f32 %v1499_v32, %v976_v17 }
 0x948   :  { %v999_v36 = vmul.f32 %v1049_v31, %v993_v33 }
 0x949   :  { %v998_v37 = vmul.f32 %v1049_v31, %v992_v34 }
 0x94a   :  { %v1005_v38 = vadd.f32 %v1050_v35, %v999_v36 }
 0x94b   :  { %v1004_v39 = vadd.f32 %v1050_v35, %v998_v37 }
 0x94c   :  { %1007 = vst.msk [vmem:[#allocation2 + $0x8] sm:$0xff] %vm61_vm1, %v1005_v38 }
 0x94d   :  { %1006 = vst.msk [vmem:[#allocation2] sm:$0xff] %vm61_vm1, %v1004_v39 }
 0x94e   :  { %1511 = shalt.err (!%p1508_p4)
}
 0x94f   :  { %s1512_s7 = scalar_lea.hbm %s1907_s12, 256 }
 0x950   :  { %p1513_p5 = scmp.ne.s32.totalorder %s1907_s12, %s1512_s7  ;;  %p1516_p6 = scmp.lt.u32.totalorder %s1512_s7, %s1907_s12 }
 0x952   :  { %p1518_p7 = pnand %p1516_p6, %p1513_p5 }
 0x954   :  { %1521 = shalt.err (!%p1518_p7)
}
 0x955   :  { %s1525_s0 = smov 128   ;;  %s1526_s20 = smov 8  }
 0x956   :  { %1019 = dma.vmem_to_hbm [thread:$0]  %s1014_s2, 256, %s1907_s12, [#allocation3], %s1525_s0, %s1525_s0, %s1526_s20  }
 0x957   :  { %1522 = dma.done.wait [#allocation3], 256  }
 0x958   :  { %1523 = vsyncadd [#allocation3], 4294967040 }
 0x959   :  { %1023 = vsyncpa [#allocation3], 1 }

</bundles_post_ra>
